<compile_context>
chip_gen: v6e
topology: v6e:2x2x1
jax: 0.10.0
libtpu: 0.0.40
codegen_flags: <defaults>
</compile_context>

<pallas_src>
import functools

import jax
import jax.numpy as jnp
from jax.experimental import pallas as pl
from jax.experimental.pallas import tpu as pltpu

_LANE = 128
_BLOCK_BYTES = 4 * 1024 * 1024        # per operand, per pipeline buffer
_VMEM_LIMIT_BYTES = 40 * 1024 * 1024  # covers 3 x 2 x 4 MiB + headroom, <= v7x cap


def _stable_log1m(p):
    """log(1 - p) with log1p(-p) accuracy (PyTorch BCELoss uses log1p).

    Written with ops that have guaranteed Mosaic lowerings (log, div, select)
    instead of lax.log1p.  Goldberg's correction: with u = fl(1 - p),
    log1p(-p) = log(u) * (-p) / (u - 1); when u rounds to 1 the answer is -p.
    p == 1 gives -inf (clamped to -100 by the caller, matching PyTorch).
    """
    u = 1.0 - p
    um1 = u - 1.0                      # rounded -p
    exact = um1 == 0.0                 # 1 - p rounded all the way back to 1
    safe = jnp.where(exact, 1.0, um1)
    corrected = jnp.log(u) * ((-p) / safe)
    return jnp.where(exact, -p, corrected)


def _bce_kernel(p_ref, t_ref, o_ref, *, flip_on_axis2):
    p = p_ref[...].astype(jnp.float32)   # stream in native dtype, cast in-kernel
    t = t_ref[...].astype(jnp.float32)
    if flip_on_axis2:
        # Fused channel expansion cat([t, 1 - t], dim=1): grid axis 2 (size 2)
        # selects the plain (f=0) or complemented (f=1) half of the target.
        flip = (pl.program_id(2) == 1).astype(jnp.float32)
        t = flip + (1.0 - 2.0 * flip) * t
    # PyTorch BCELoss clamps each log term at -100 for numerical stability.
    log_p = jnp.maximum(jnp.log(p), -100.0)
    log_1mp = jnp.maximum(_stable_log1m(p), -100.0)
    loss = -(t * log_p + (1.0 - t) * log_1mp)
    o_ref[...] = loss.astype(o_ref.dtype)


def _block_rows(num_rows, itemsize):
    """Rows per block: ~_BLOCK_BYTES per operand, multiple of 8, <= num_rows."""
    rows = _BLOCK_BYTES // (_LANE * itemsize)
    rows = max(8, (rows // 8) * 8)
    return num_rows if num_rows <= rows else rows


def _bce_flat_call(p2, t2):
    """p2, t2: [R, 128] views; elementwise BCE over a 1-D grid of row blocks."""
    r, lane = p2.shape
    itemsize = max(p2.dtype.itemsize, t2.dtype.itemsize)
    br = _block_rows(r, itemsize)
    grid = (pl.cdiv(r, br),)           # partial trailing block handled by Pallas
    kernel = functools.partial(_bce_kernel, flip_on_axis2=False)
    return pl.pallas_call(
        kernel,
        out_shape=jax.ShapeDtypeStruct((r, lane), p2.dtype),
        grid_spec=pltpu.PrefetchScalarGridSpec(
            num_scalar_prefetch=0,
            grid=grid,
            in_specs=[
                pl.BlockSpec((br, lane), lambda i: (i, 0)),
                pl.BlockSpec((br, lane), lambda i: (i, 0)),
            ],
            out_specs=pl.BlockSpec((br, lane), lambda i: (i, 0)),
        ),
        compiler_params=pltpu.CompilerParams(
            dimension_semantics=("parallel",),   # shards across v7x's two TCs
            vmem_limit_bytes=_VMEM_LIMIT_BYTES),
    )(p2, t2)


def _bce_expand_call(p4, t4):
    """p4: [N, 2, M, 128] predictions, t4: [N, 1, M, 128] targets.

    Grid = (N blocks, M blocks, 2).  The size-2 complement axis is innermost
    and 'arbitrary' so consecutive steps reuse the same target block (no
    re-fetch from HBM); the N / M axes are 'parallel' for megacore sharding.
    """
    n, two, m, lane = p4.shape
    assert two == 2 and lane == _LANE and t4.shape == (n, 1, m, lane)
    itemsize = max(p4.dtype.itemsize, t4.dtype.itemsize)
    bm = _block_rows(m, itemsize)
    if bm == m:
        bn = max(1, min(n, _BLOCK_BYTES // max(1, m * lane * itemsize)))
    else:
        bn = 1
    grid = (pl.cdiv(n, bn), pl.cdiv(m, bm), 2)
    kernel = functools.partial(_bce_kernel, flip_on_axis2=True)
    return pl.pallas_call(
        kernel,
        out_shape=jax.ShapeDtypeStruct((n, 2, m, lane), p4.dtype),
        grid_spec=pltpu.PrefetchScalarGridSpec(
            num_scalar_prefetch=0,
            grid=grid,
            in_specs=[
                pl.BlockSpec((bn, 1, bm, lane), lambda i, j, f: (i, f, j, 0)),
                # Target block index is independent of f -> fetched once per (i, j).
                pl.BlockSpec((bn, 1, bm, lane), lambda i, j, f: (i, 0, j, 0)),
            ],
            out_specs=pl.BlockSpec((bn, 1, bm, lane), lambda i, j, f: (i, f, j, 0)),
        ),
        compiler_params=pltpu.CompilerParams(
            dimension_semantics=("parallel", "parallel", "arbitrary"),
            vmem_limit_bytes=_VMEM_LIMIT_BYTES),
    )(p4, t4)


def bce_loss(y_pred, y_true):
    """torch.nn.BCELoss(reduction='none') with the module's channel expansion.

    If channel dims differ the target is (virtually) expanded as
    cat([y_true, 1 - y_true], dim=1) inside the kernel.  Returns an array with
    the same shape and dtype as y_pred.
    """
    c_pred = y_pred.shape[1]
    c_true = y_true.shape[1]
    expanded = (y_true.shape if c_pred == c_true
                else (y_true.shape[0], 2 * c_true) + y_true.shape[2:])
    assert expanded == y_pred.shape, 'predict & target shape do not match'

    if c_pred == c_true:
        total = y_pred.size
        if total % _LANE == 0:
            # No expansion needed: collapse everything to one lane-dense view.
            r = total // _LANE
            out = _bce_flat_call(y_pred.reshape(r, _LANE),
                                 y_true.reshape(r, _LANE))
            return out.reshape(y_pred.shape)
    else:
        n_batch = y_pred.shape[0]
        spatial = 1
        for d in y_pred.shape[2:]:
            spatial *= d
        half = c_true * spatial
        if half % _LANE == 0:
            # Free contiguous views: y_pred [N, 2*Ct, S] -> [N, 2, Ct*S/128, 128],
            # y_true [N, Ct, S] -> [N, 1, Ct*S/128, 128].
            m = half // _LANE
            p4 = y_pred.reshape(n_batch, 2, m, _LANE)
            t4 = y_true.reshape(n_batch, 1, m, _LANE)
            out = _bce_expand_call(p4, t4)
            return out.reshape(y_pred.shape)

    # TODO(synk): ragged fallback (element count not a multiple of 128) still pays
    # wrapper-side expand/pad/slice HBM passes; move the tail into the kernel
    # (masked trailing block) to eliminate them.
    if c_pred != c_true:
        y_true = jnp.concatenate((y_true, 1 - y_true), axis=1)
    flat_p = y_pred.reshape(-1)
    flat_t = y_true.reshape(-1)
    total = flat_p.size
    pad = (-total) % _LANE
    if pad:
        flat_p = jnp.pad(flat_p, (0, pad), constant_values=0.5)
        flat_t = jnp.pad(flat_t, (0, pad), constant_values=0.5)
    r = (total + pad) // _LANE
    out = _bce_flat_call(flat_p.reshape(r, _LANE), flat_t.reshape(r, _LANE))
    return out.reshape(-1)[:total].reshape(y_pred.shape)


if __name__ == "__main__":
    key = jax.random.PRNGKey(0)
    k1, k2, k3, k4 = jax.random.split(key, 4)
    N, C, H, W = 2, 4, 16, 16

    def ref_bce(p, t):
        log_p = jnp.maximum(jnp.log(p), -100.0)
        log_1mp = jnp.maximum(jnp.log1p(-p), -100.0)
        return -(t * log_p + (1.0 - t) * log_1mp)

    # 1) Channel-mismatch path: 4-channel predictions vs 2-channel targets
    #    (the module's cat([t, 1 - t], dim=1) expansion, fused into the kernel).
    y_pred = jax.nn.sigmoid(jax.random.normal(k1, (N, C, H, W), jnp.float32))
    y_true = (jax.random.uniform(k2, (N, C // 2, H, W)) > 0.5).astype(jnp.float32)
    out = jax.block_until_ready(bce_loss(y_pred, y_true))
    yt = jnp.concatenate((y_true, 1.0 - y_true), axis=1)
    assert out.shape == y_pred.shape and out.dtype == y_pred.dtype
    assert jnp.allclose(out, ref_bce(y_pred, yt), atol=1e-5, rtol=1e-5)

    # 2) Matching-channel path with soft (fractional) targets -> flat kernel.
    y_soft = jax.nn.sigmoid(jax.random.normal(k3, (N, C, H, W), jnp.float32))
    out2 = jax.block_until_ready(bce_loss(y_pred, y_soft))
    assert out2.shape == y_pred.shape and out2.dtype == y_pred.dtype
    assert jnp.allclose(out2, ref_bce(y_pred, y_soft), atol=1e-5, rtol=1e-5)

    # 3) Ragged fallback: element count not a multiple of 128.
    y_pred_r = jax.nn.sigmoid(jax.random.normal(k4, (N, 2, 9, 7), jnp.float32))
    y_true_r = (jax.random.uniform(k2, (N, 1, 9, 7)) > 0.5).astype(jnp.float32)
    out3 = jax.block_until_ready(bce_loss(y_pred_r, y_true_r))
    yt_r = jnp.concatenate((y_true_r, 1.0 - y_true_r), axis=1)
    assert out3.shape == y_pred_r.shape
    assert jnp.allclose(out3, ref_bce(y_pred_r, yt_r), atol=1e-5, rtol=1e-5)

    print("KERNEL_OK")
</pallas_src>

<mosaic_0001>
module attributes {stable_mosaic.version = 11 : i64} {
  func.func @_bce_kernel(%arg0: i32, %arg1: i32, %arg2: i32, %arg3: memref<2x1x4x128xf32, #tpu.memory_space<vmem>>, %arg4: memref<2x1x4x128xf32, #tpu.memory_space<vmem>>, %arg5: memref<2x1x4x128xf32, #tpu.memory_space<vmem>>) attributes {dimension_semantics = [#tpu.dimension_semantics<parallel>, #tpu.dimension_semantics<parallel>, #tpu.dimension_semantics<arbitrary>], iteration_bounds = array<i64: 1, 1, 2>, scalar_prefetch = 0 : i64, scratch_operands = 0 : i64, tpu.core_type = #tpu.core_type<tc>, window_params = [{transform_indices = @transform_0, window_bounds = array<i64: 2, 1, 4, 128>}, {transform_indices = @transform_1, window_bounds = array<i64: 2, 1, 4, 128>}, {transform_indices = @transform_2, window_bounds = array<i64: 2, 1, 4, 128>}]} {
    %c0 = arith.constant 0 : index
    %c0_0 = arith.constant 0 : index
    %c0_1 = arith.constant 0 : index
    %c0_2 = arith.constant 0 : index
    %0 = vector.load %arg3[%c0, %c0_0, %c0_1, %c0_2] : memref<2x1x4x128xf32, #tpu.memory_space<vmem>>, vector<2x1x4x128xf32>
    %c0_3 = arith.constant 0 : index
    %c0_4 = arith.constant 0 : index
    %c0_5 = arith.constant 0 : index
    %c0_6 = arith.constant 0 : index
    %1 = vector.load %arg4[%c0_3, %c0_4, %c0_5, %c0_6] : memref<2x1x4x128xf32, #tpu.memory_space<vmem>>, vector<2x1x4x128xf32>
    %c1_i32 = arith.constant 1 : i32
    %2 = arith.cmpi eq, %arg2, %c1_i32 : i32
    %3 = arith.extui %2 : i1 to i32
    %4 = arith.sitofp %3 : i32 to f32
    %cst = arith.constant 2.000000e+00 : f32
    %5 = arith.mulf %cst, %4 : f32
    %cst_7 = arith.constant 1.000000e+00 : f32
    %6 = arith.subf %cst_7, %5 : f32
    %7 = vector.broadcast %6 : f32 to vector<2x1x4x128xf32>
    %8 = arith.mulf %7, %1 : vector<2x1x4x128xf32>
    %9 = vector.broadcast %4 : f32 to vector<2x1x4x128xf32>
    %10 = arith.addf %9, %8 : vector<2x1x4x128xf32>
    %11 = math.log %0 : vector<2x1x4x128xf32>
    %cst_8 = arith.constant -1.000000e+02 : f32
    %12 = vector.broadcast %cst_8 : f32 to vector<2x1x4x128xf32>
    %13 = arith.maximumf %11, %12 : vector<2x1x4x128xf32>
    %cst_9 = arith.constant 1.000000e+00 : f32
    %14 = vector.broadcast %cst_9 : f32 to vector<2x1x4x128xf32>
    %15 = arith.subf %14, %0 : vector<2x1x4x128xf32>
    %cst_10 = arith.constant 1.000000e+00 : f32
    %16 = vector.broadcast %cst_10 : f32 to vector<2x1x4x128xf32>
    %17 = arith.subf %15, %16 : vector<2x1x4x128xf32>
    %cst_11 = arith.constant 0.000000e+00 : f32
    %18 = vector.broadcast %cst_11 : f32 to vector<2x1x4x128xf32>
    %19 = arith.cmpf oeq, %17, %18 : vector<2x1x4x128xf32>
    %cst_12 = arith.constant 1.000000e+00 : f32
    %20 = vector.broadcast %cst_12 : f32 to vector<2x1x4x128xf32>
    %21 = arith.select %19, %20, %17 : vector<2x1x4x128xi1>, vector<2x1x4x128xf32>
    %22 = math.log %15 : vector<2x1x4x128xf32>
    %cst_13 = arith.constant 0.000000e+00 : f32
    %23 = vector.broadcast %cst_13 : f32 to vector<2x1x4x128xf32>
    %24 = arith.subf %23, %0 : vector<2x1x4x128xf32>
    %25 = arith.divf %24, %21 : vector<2x1x4x128xf32>
    %26 = arith.mulf %22, %25 : vector<2x1x4x128xf32>
    %cst_14 = arith.constant 0.000000e+00 : f32
    %27 = vector.broadcast %cst_14 : f32 to vector<2x1x4x128xf32>
    %28 = arith.subf %27, %0 : vector<2x1x4x128xf32>
    %29 = arith.select %19, %28, %26 : vector<2x1x4x128xi1>, vector<2x1x4x128xf32>
    %cst_15 = arith.constant -1.000000e+02 : f32
    %30 = vector.broadcast %cst_15 : f32 to vector<2x1x4x128xf32>
    %31 = arith.maximumf %29, %30 : vector<2x1x4x128xf32>
    %32 = arith.mulf %10, %13 : vector<2x1x4x128xf32>
    %cst_16 = arith.constant 1.000000e+00 : f32
    %33 = vector.broadcast %cst_16 : f32 to vector<2x1x4x128xf32>
    %34 = arith.subf %33, %10 : vector<2x1x4x128xf32>
    %35 = arith.mulf %34, %31 : vector<2x1x4x128xf32>
    %36 = arith.addf %32, %35 : vector<2x1x4x128xf32>
    %cst_17 = arith.constant 0.000000e+00 : f32
    %37 = vector.broadcast %cst_17 : f32 to vector<2x1x4x128xf32>
    %38 = arith.subf %37, %36 : vector<2x1x4x128xf32>
    %c0_18 = arith.constant 0 : index
    %c0_19 = arith.constant 0 : index
    %c0_20 = arith.constant 0 : index
    %c0_21 = arith.constant 0 : index
    %39 = vector.load %arg5[%c0_18, %c0_19, %c0_20, %c0_21] : memref<2x1x4x128xf32, #tpu.memory_space<vmem>>, vector<2x1x4x128xf32>
    tpu.vector_store %arg5[%c0_18, %c0_19, %c0_20, %c0_21], %38 {strides = array<i32>} : memref<2x1x4x128xf32, #tpu.memory_space<vmem>>, vector<2x1x4x128xf32>,
    return
  }
  func.func @transform_0(%arg0: i32, %arg1: i32, %arg2: i32) -> (i32, i32, i32, i32) {
    %c0_i32 = arith.constant 0 : i32
    %c0_i32_0 = arith.constant 0 : i32
    return %arg0, %arg2, %arg1, %c0_i32 : i32, i32, i32, i32
  }
  func.func @transform_1(%arg0: i32, %arg1: i32, %arg2: i32) -> (i32, i32, i32, i32) {
    %c0_i32 = arith.constant 0 : i32
    %c0_i32_0 = arith.constant 0 : i32
    %c0_i32_1 = arith.constant 0 : i32
    return %arg0, %c0_i32, %arg1, %c0_i32_0 : i32, i32, i32, i32
  }
  func.func @transform_2(%arg0: i32, %arg1: i32, %arg2: i32) -> (i32, i32, i32, i32) {
    %c0_i32 = arith.constant 0 : i32
    %c0_i32_0 = arith.constant 0 : i32
    return %arg0, %arg2, %arg1, %c0_i32 : i32, i32, i32, i32
  }
}

</mosaic_0001>

<bundles_post_ra>
// kernel: tpu_custom_call.1
= control target key start
LH: loop header
LB: loop body
LE: loop exit
PB: predicated region body
PF: predicated region fallthrough
CT: control target
= control target key end

     0   :  { %7 = vsyncpa [#allocation3], 0  ;;  %s860_s0 = inlined_call_operand.hbm [shape: f32[2,2,4,128], index: 0, kind: input, shape index: {}]   ;;  %s861_s1 = inlined_call_operand.hbm [shape: f32[2,1,4,128], index: 1, kind: input, shape index: {}]   ;;  %s862_s2 = inlined_call_operand.hbm [shape: f32[2,2,4,128], index: 2, kind: output, shape index: {}]  }
   0x1   :  { %9 = vsyncpa [#allocation3 + $0x1], 0 }
   0x2   :  { %10 = vsyncpa [#allocation6], 0 }
   0x3   :  { %11 = vsyncpa [#allocation4], 0 }
   0x4   :  { %13 = vsyncpa [#allocation4 + $0x1], 0  ;;  %s671_s9 = smov 0   ;;  %s673_s10 = smov 0  }
   0x5   :  { %s675_s11 = smov 0   ;;  %s677_s12 = smov 0  }
   0x6   :  { %s679_s13 = smov 0   ;;  %s681_s14 = smov 0  }
   0x7 LB: > { %868 = sst [smem:[#allocation11_spill]] %s645_s14  ;;  %s399_s15 = sadd.s32 4294967295, %s645_s14   ;;  %s645_s14 = sphi %s681_s14, %s888_s14   ;;  %s641_s13 = sphi %s679_s13, %s887_s13   ;;  %s637_s12 = sphi %s677_s12, %s886_s12   ;;  %s633_s11 = sphi %s675_s11, %s885_s11   ;;  %s629_s10 = sphi %s673_s10, %s884_s10   ;;  %s625_s9 = sphi %s671_s9, %s883_s9  }
   0x8   : > { %s400_s16 = sadd.s32 4294967294, %s645_s14   ;;  %p56_p0 = scmp.ne.s32.totalorder %s633_s11, %s629_s10 }
   0x9   : > { %p57_p1 = scmp.eq.s32.totalorder %s645_s14, 0  ;;  %p62_p2 = scmp.ne.s32.totalorder %s629_s10, %s625_s9 }
   0xa   : > { %p708_p3 = scmp.eq.s32.totalorder %s399_s15, 0  ;;  %p118_p5 = scmp.eq.s32.totalorder %s399_s15, 1 }
   0xb   : > { %p712_p4 = por %p57_p1, %p56_p0  ;;  %p124_p7 = scmp.eq.s32.totalorder %s400_s16, 1 }
   0xc   : > { %p718_p6 = por %p708_p3, %p62_p2  ;;  %p722_p8 = por %p118_p5, %p56_p0 }
   0xd   : > { %p401_p9 = scmp.ge.s32.totalorder %s645_s14, 1  ;;  %p727_p10 = por %p124_p7, %p62_p2 }
   0xe   : > { %s871_s19 = scalar_select %p718_p6, 1, 0 }
   0xf   : > { %s872_s20 = scalar_select %p722_p8, 1, 0 }
  0x10   : > { %s873_s21 = scalar_select %p727_p10, 1, 0 }
  0x11   : > { %p131_p11 = scmp.lt.s32.totalorder %s645_s14, 3  ;;  %s647_s23 = smov [#allocation5]  }
  0x12   : > { %s147_s24 = sshll.u32 %s647_s23, 4  ;;  %p437_p1 = scmp.lt.s32.totalorder %s645_s14, 2  ;;  %s148_s24 = int_to_ptr.vmem [resolvable:$true] %s147_s24 }
  0x13   : > { %p732_p12 = pnand %p401_p9, %p131_p11  ;;  %s31_s27 = sadd.s32 1, %s641_s13 }
  0x14   : > { %p748_p2 = pnand %p437_p1, %p712_p4  ;;  %s518_s28 = scalar_lea.vmem %s148_s24, 128 }
  0x15   : > { %p424_p13 = pneg %p732_p12  ;;  %p519_p9 = scmp.ne.s32.totalorder %s148_s24, %s518_s28 }
  0x16   : > { %p526_p0 = scmp.lt.s32.totalorder %s148_s24, %s148_s24  ;;  %p527_p8 = scmp.lt.s32.totalorder %s518_s28, %s518_s28 }
  0x17   : > { %p742_p5 = pnand %p424_p13, %p708_p3 }
  0x18   : > { %p528_p6 = por %p527_p8, %p526_p0 }
  0x19   : > { %p509_p7 = pneg %p742_p5 }
  0x1b   : > { %p521_p11 = pnand %p519_p9, %p509_p7 }
  0x1d   : > { %p522_p10 = pneg %p521_p11 }
  0x1f   : > { %p529_p13 = pnand %p528_p6, %p522_p10 }
  0x21   : > { %532 = shalt.err (!%p529_p13)
}
  0x22   : > { %s867_s29 = smov 64   ;;  %s649_s30 = smov 4  }
  0x23   : > { %427 = dma.hbm_to_vmem [thread:$0]  (!%p742_p5), %s861_s1, 128, %s148_s24, [#allocation6], %s867_s29, %s867_s29, %s649_s30  }
  0x24   : > { %p32_p4 = scmp.ge.s32.totalorder %s31_s27, 2  ;;  %s49_s5 = sadd.s32 1, %s633_s11 }
  0x25   : > { %s161_s6 = sand.u32 1, %s633_s11   ;;  %s405_s15 = sshll.u32 %s641_s13, 6 }
  0x26   : > { %s890_s27 = smov (%p32_p4, %s31_s27), 0  ;;  %s404_s7 = sshll.u32 %s161_s6, 3 }
  0x27   : > { %s43_s8 = ssub.s32 %s641_s13, %s890_s27  ;;  %s174_s23 = scalar_lea.hbm %s860_s0, %s405_s15 }
  0x28   : > { %p47_p6 = scmp.eq.s32.totalorder %s43_s8, 0  ;;  %s165_s25 = scalar_lea.vmem [#allocation2], %s404_s7 }
  0x29   : > { %s175_s28 = sshll.u32 %s165_s25, 4  ;;  %s162_s24 = scalar_lea.sflag [#allocation3], %s161_s6  ;;  %s176_s28 = int_to_ptr.vmem [resolvable:$true] %s175_s28 }
  0x2a   : > { %s774_s14 = scalar_select %p47_p6, %s633_s11, %s49_s5  }
  0x2b   : > { %p535_p8 = pneg %p748_p2  ;;  %s546_s3 = scalar_lea.vmem %s176_s28, 128 }
  0x2c   : > { %p547_p10 = scmp.ne.s32.totalorder %s176_s28, %s546_s3  ;;  %s650_s4 = smov [#allocation2]  }
  0x2d   : > { %s551_s29 = sshll.u32 %s650_s4, 4  ;;  %s552_s29 = int_to_ptr.vmem [resolvable:$false] %s551_s29 }
  0x2e   : > { %p549_p0 = pnand %p547_p10, %p535_p8  ;;  %s553_s8 = scalar_lea.vmem %s552_s29, 256 }
  0x2f   : > { %p554_p5 = scmp.lt.s32.totalorder %s176_s28, %s552_s29  ;;  %p555_p7 = scmp.lt.s32.totalorder %s553_s8, %s546_s3 }
  0x30   : > { %p550_p1 = pneg %p549_p0 }
  0x31   : > { %p556_p9 = por %p555_p7, %p554_p5 }
  0x33   : > { %p557_p11 = pnand %p556_p9, %p550_p1 }
  0x35   : > { %560 = shalt.err (!%p557_p11)
}
  0x36   : > { %s651_s7 = smov 128   ;;  %s877_s5 = smov 64  }
  0x37   : > { %431 = dma.hbm_to_vmem [thread:$0]  (!%p748_p2), %s174_s23, 128, %s176_s28, %s162_s24, %s651_s7, %s877_s5, %s649_s30  }
  0x38   : > { %187 = sbr.rel (%p732_p12) target bundleno = 114 (0x72), region = 28  ;;  %s785_s6 = sand.u32 (!%p732_p12), 1, %s629_s10  }
  0x39   : > { %s407_s29 = sshll.u32 (!%p732_p12), %s785_s6, 3  ;;  %s190_s15 = scalar_lea.sflag (!%p732_p12), [#allocation3], %s785_s6 }
  0x3a   : > { %s193_s16 = scalar_lea.vmem (!%p732_p12), [#allocation2], %s407_s29  ;;  %p878_p13 = scmp.ne.s32.totalorder (!%p732_p12), %s871_s19, 0 }
  0x3d   : > { %612 = dma.done.wait (%p878_p13), %s190_s15, 128  }
  0x3e   : > { %614 = vsyncadd (%p878_p13), %s190_s15, 4294967168 }
  0x3f   : > { %616 = dma.done.wait (%p708_p3), [#allocation6], 128  }
  0x40   : > { %618 = vsyncadd (%p708_p3), [#allocation6], 4294967168  ;;  %p225_p12 = scmp.eq.s32.totalorder %s637_s12, 1  ;;  %v221_v0 = vld [vmem:[%s193_s16] sm:$0xf]  ;;  %s217_s30 = scalar_lea.vmem [#allocation7], %s407_s29 }
  0x41   : > { %v222_v1 = vld [vmem:[%s193_s16 + $0x4] sm:$0xf]  ;;  %495 = vlog2.f32 %v221_v0  ;;  %v242_v2 = vsub.f32 1.0, %v221_v0  ;;  %v223_v8 = vld [vmem:[#allocation5] sm:$0xf]  ;;  %v254_v17 = vsub.f32 0.0, %v221_v0 }
  0x42   : > { %s226_s22 = scalar_select %p225_p12, 1, 0  ;;  %v243_v3 = vsub.f32 1.0, %v222_v1  ;;  %497 = vlog2.f32 %v222_v1  ;;  %v224_v11 = vld [vmem:[#allocation5 + $0x4] sm:$0xf]  ;;  %v255_v20 = vsub.f32 0.0, %v222_v1 }
  0x43   : > { %v410_v4 = vadd.f32 -1.0, %v242_v2  ;;  %499 = vlog2.f32 %v242_v2  ;;  %s295_s18 = sshll.u32 %s217_s30, 4  ;;  %s413_s23 = sshll.u32 %s637_s12, 6  ;;  %s807_s18 = int_to_ptr.vmem [resolvable:$true] %s295_s18 }
  0x44   : > { %s227_s26 = scvt.s32.f32 %s226_s22  ;;  %v411_v5 = vadd.f32 -1.0, %v243_v3  ;;  %501 = vlog2.f32 %v243_v3  ;;  %s812_s24 = scalar_lea.hbm %s862_s2, %s413_s23 }
  0x45   : > { %vm246_vm0 = vcmp.eq.f32.partialorder %v410_v4, 0.0  ;;  %s279_s3 = scalar_lea.sflag [#allocation4], %s785_s6  ;;  %s561_s4 = scalar_lea.vmem %s807_s18, 128 }
  0x46   : > { %s228_s19 = smul.f32 2.0, %s227_s26  ;;  %vm247_vm1 = vcmp.eq.f32.partialorder %v411_v5, 0.0  ;;  %v248_v6 = vsel %vm246_vm0, 1.0, %v410_v4  ;;  %v233_v16 = vstv %s227_s26  ;;  %p562_p3 = scmp.ne.s32.totalorder %s807_s18, %s561_s4 }
  0x47   : > { %v249_v7 = vsel %vm247_vm1, 1.0, %v411_v5  ;;  %503 = vrcp.f32 %v248_v6  ;;  %p879_p2 = scmp.ne.s32.totalorder %s872_s20, 0  ;;  %s652_s12 = smov [#allocation7]  }
  0x48   : > { %505 = vrcp.f32 %v249_v7  ;;  %s229_s17 = ssub.f32 1.0, %s228_s19  ;;  %s565_s8 = sshll.u32 %s652_s12, 4  ;;  %s566_s8 = int_to_ptr.vmem [resolvable:$false] %s565_s8 }
  0x49   : > { %p563_p4 = pnand %p562_p3, %p879_p2  ;;  %s567_s7 = scalar_lea.vmem %s566_s8, 256 }
  0x4a   : > { %v230_v9 = vstv %s229_s17  ;;  %p568_p8 = scmp.lt.s32.totalorder %s807_s18, %s566_s8  ;;  %p569_p10 = scmp.lt.s32.totalorder %s567_s7, %s561_s4 }
  0x4b   : > { %v231_v14 = vmul.f32 %v230_v9, %v223_v8  ;;  %v232_v18 = vmul.f32 %v230_v9, %v224_v11  ;;  %p564_p6 = pneg %p563_p4 }
  0x4c   : > { %p570_p0 = por %p569_p10, %p568_p8 }
  0x4d   : > { %v234_v24 = vadd.f32 %v233_v16, %v231_v14  ;;  %v235_v28 = vadd.f32 %v233_v16, %v232_v18 }
  0x4e   : > { %v496_v10 = vpop.eup %495  ;;  %p571_p1 = pnand %p570_p0, %p564_p6 }
  0x4f   : > { %v498_v12 = vpop.eup %497  ;;  %v237_v19 = vmul.f32 0.6931472, %v496_v10  ;;  %v268_v33 = vsub.f32 1.0, %v234_v24  ;;  %v269_v36 = vsub.f32 1.0, %v235_v28 }
  0x50   : > { %v500_v13 = vpop.eup %499  ;;  %v239_v22 = vmul.f32 0.6931472, %v498_v12 }
  0x51   : > { %v502_v15 = vpop.eup %501  ;;  %v251_v21 = vmul.f32 0.6931472, %v500_v13  ;;  %v240_v29 = vmax.f32 %v237_v19, -100.0 }
  0x52   : > { %v253_v25 = vmul.f32 0.6931472, %v502_v15  ;;  %v241_v32 = vmax.f32 %v239_v22, -100.0 }
  0x53   : > { %v266_v38 = vmul.f32 %v240_v29, %v234_v24 }
  0x54   : > { %v504_v23 = vpop.eup %503  ;;  %v267_v41 = vmul.f32 %v241_v32, %v235_v28 }
  0x55   : > { %v506_v26 = vpop.eup %505  ;;  %v257_v27 = vmul.f32 %v504_v23, %v254_v17 }
  0x56   : > { %v259_v30 = vmul.f32 %v506_v26, %v255_v20 }
  0x57   : > { %v260_v31 = vmul.f32 %v257_v27, %v251_v21 }
  0x58   : > { %v261_v34 = vmul.f32 %v259_v30, %v253_v25 }
  0x59   : > { %v262_v35 = vsel %vm246_vm0, %v254_v17, %v260_v31 }
  0x5a   : > { %v264_v37 = vmax.f32 %v262_v35, -100.0  ;;  %v263_v39 = vsel %vm247_vm1, %v255_v20, %v261_v34 }
  0x5b   : > { %v265_v40 = vmax.f32 %v263_v39, -100.0 }
  0x5c   : > { %v270_v42 = vmul.f32 %v268_v33, %v264_v37 }
  0x5d   : > { %v271_v43 = vmul.f32 %v269_v36, %v265_v40 }
  0x5e   : > { %v272_v44 = vadd.f32 %v270_v42, %v266_v38 }
  0x5f   : > { %v273_v45 = vadd.f32 %v271_v43, %v267_v41 }
  0x60   : > { %v274_v46 = vsub.f32 0.0, %v272_v44 }
  0x61   : > { %v275_v47 = vsub.f32 0.0, %v273_v45 }
  0x62   : > { %276 = vst [vmem:[%s217_s30] sm:$0xf] %v274_v46 }
  0x63   : > { %277 = vst [vmem:[%s217_s30 + $0x4] sm:$0xf] %v275_v47 }
  0x64   : > { %574 = shalt.err (!%p571_p1)
}
  0x65   : > { %s575_s5 = scalar_lea.hbm %s812_s24, 128  ;;  %s579_s16 = scalar_lea.hbm %s862_s2, 256 }
  0x66   : > { %p576_p5 = scmp.ne.s32.totalorder %s812_s24, %s575_s5  ;;  %p580_p11 = scmp.lt.s32.totalorder %s812_s24, %s862_s2 }
  0x67   : > { %p581_p13 = scmp.lt.s32.totalorder %s579_s16, %s575_s5 }
  0x68   : > { %p577_p7 = pnand %p576_p5, %p879_p2 }
  0x69   : > { %p582_p12 = por %p581_p13, %p580_p11 }
  0x6a   : > { %p578_p9 = pneg %p577_p7 }
  0x6c   : > { %p583_p3 = pnand %p582_p12, %p578_p9 }
  0x6e   : > { %586 = shalt.err (!%p583_p3)
}
  0x6f   : > { %s653_s19 = smov 64   ;;  %s654_s17 = smov 128  }
  0x70   : > { %s655_s30 = smov 4  }
  0x71   : > { %422 = dma.vmem_to_hbm [thread:$0]  (%p879_p2), %s807_s18, 128, %s812_s24, %s279_s3, %s653_s19, %s654_s17, %s655_s30  }
  0x72 PF: > { %s880_s23 = sld [smem:[#allocation11_spill]]  ;;  %s310_s25 = sand.u32 1, %s625_s9  }
  0x73   : > { %p881_p4 = scmp.ne.s32.totalorder %s873_s21, 0  ;;  %s311_s28 = scalar_lea.sflag [#allocation4], %s310_s25 }
  0x78   : > { %p882_p6 = scmp.ge.s32.totalorder %s880_s23, 2 }
  0x7a   : > { %p433_p8 = pnand %p882_p6, %p881_p4 }
  0x7c   : > { %p434_p10 = pneg %p433_p8 }
  0x7e   : > { %620 = dma.done.wait (%p434_p10), %s311_s28, 128  }
  0x7f   : > { %622 = vsyncadd (%p434_p10), %s311_s28, 4294967168  ;;  %s19_s4 = sadd.s32 1, %s880_s23   ;;  %s883_s9 = smov %s629_s10 }
  0x80   : > { %p16_p0 = scmp.ge.s32.totalorder %s19_s4, 4   ;;  %s884_s10 = smov %s633_s11 }
  0x81   : > { %s885_s11 = smov %s774_s14  ;;  %s886_s12 = smov %s641_s13 }
  0x82   : > { %s887_s13 = smov %s890_s27  ;;  %s888_s14 = smov %s19_s4 }
  0x83   :  { %18 = sbr.rel (!%p16_p0) target bundleno = 7 (0x7), region = 78 }
  0x88   :  { %316 = vsyncpa [#allocation3], 1 }
  0x89   :  { %318 = vsyncpa [#allocation3 + $0x1], 1 }
  0x8a   :  { %319 = vsyncpa [#allocation6], 1 }
  0x8b   :  { %320 = vsyncpa [#allocation4], 1 }
  0x8c   :  { %322 = vsyncpa [#allocation4 + $0x1], 1 }

</bundles_post_ra>
